<compile_context>
chip_gen: v7x
topology: tpu7x:2x2x1
jax: 0.10.0
libtpu: 0.0.40
codegen_flags: <defaults>
</compile_context>

<pallas_src>
import numpy as np
import jax
import jax.numpy as jnp
from jax import lax
from jax.experimental import pallas as pl
from jax.experimental.pallas import tpu as pltpu

# ----------------------------- small synthetic config -----------------------------
B = 2                      # batch
IN_CH = 3                  # RGB
FRAME_INTERVAL = 4         # T (all_frames)
TUBELET = 2                # VideoMAE tubelet size
IMG_H = IMG_W = 32         # img_size
PATCH = 8                  # patch size
HIDDEN_DIM = 16            # encoder embed dim  (model.hidden_dim)
EMBED_DIM = 8              # proj out channels  (model.embed_dim before //tubelet)
EMBED_H, EMBED_W = 2, 2    # embed_size -> AdaptiveAvgPool3d spatial target

HIDDEN_T = FRAME_INTERVAL // TUBELET            # 2
HIDDEN_H = IMG_H // PATCH                       # 4
HIDDEN_W = IMG_W // PATCH                       # 4
N_TOKENS = HIDDEN_T * HIDDEN_H * HIDDEN_W       # 32
PATCH_DIM = IN_CH * TUBELET * PATCH * PATCH     # 384

# The fused layout trick below relies on the PyTorch view
#   feats(B, N, hidden).reshape(B, hidden, t, h, w)
# factoring as  row n -> (c, t)  and  col d -> (h, w), which holds iff
# hidden_dim == hidden_h * hidden_w (true for this config).
assert HIDDEN_DIM == HIDDEN_H * HIDDEN_W
assert N_TOKENS == HIDDEN_DIM * HIDDEN_T


# --------------------------------- fused Pallas kernel ----------------------------
def _nerv3d_fused_kernel(p_ref, w2_ref, b2_ref, wbd_ref, bbd_ref, pool_ref, o_ref):
    # p:    (B*T*C, patch_dim)   patch rows pre-ordered (b, t, c)   [C == hidden_dim]
    # w2:   (patch_dim, hidden_dim)   tubelet patch-embed weight (transposed)
    # b2:   (1, hidden_dim)
    # wbd:  (B*T*E, B*T*C)            kron(I_{B*T}, proj_w) -> 1x1x1 Conv3d for all (b,t)
    # bbd:  (B*T*E, 1)                proj bias tiled per (b, t)
    # pool: (hidden_dim == h*w, eh*ew) adaptive-avg-pool matrix (transposed)
    # out:  (B*T*E, eh*ew)
    #
    # 1) patch embedding: one (B*N, patch_dim) x (patch_dim, hidden) MXU matmul.
    #    `feats` stays on-chip -- no HBM round trip.
    feats = jnp.dot(p_ref[...], w2_ref[...],
                    preferred_element_type=jnp.float32) + b2_ref[...]
    # 2) After the PyTorch reshape, feats rows == (b, t, c_new) and cols == (h, w),
    #    so the 1x1x1 Conv3d over c_new is a single block-diagonal left-multiply.
    y = jnp.dot(wbd_ref[...], feats,
                preferred_element_type=jnp.float32) + bbd_ref[...]
    # exact erf GELU (PyTorch nn.GELU default)
    y = 0.5 * y * (1.0 + lax.erf(y * 0.7071067811865476))
    # 3) AdaptiveAvgPool3d: temporal target == hidden_t (identity); spatial pooling is
    #    one matmul with the precomputed kron(P_h, P_w)^T for all (b, t, e) rows at once.
    o_ref[...] = jnp.dot(y, pool_ref[...],
                         preferred_element_type=jnp.float32).astype(o_ref.dtype)


def nerv3d_fused(patches_r, w2, b2, wbd, bbd, pool_t):
    BN, Pd = patches_r.shape
    D = w2.shape[1]
    R = wbd.shape[0]          # B*T*E
    P = pool_t.shape[1]       # eh*ew
    # Single invocation (grid=(1,)): at these shapes the op is launch/overhead bound,
    # so more grid steps would be pure per-step overhead on v5e/v6e (1 TC).
    # NOTE(v7x): with 2 TensorCores one could reintroduce a size-B "parallel" grid
    # axis to feed both cores.
    # NOTE(real shapes): at VideoMAE-L sizes, cast matmul inputs to bf16 (keep f32
    # accumulation), tile M/N/K, and raise vmem_limit_bytes for v7x's 64 MiB VMEM.
    return pl.pallas_call(
        _nerv3d_fused_kernel,
        out_shape=jax.ShapeDtypeStruct((R, P), jnp.float32),
        grid_spec=pltpu.PrefetchScalarGridSpec(
            num_scalar_prefetch=0,
            grid=(1,),
            in_specs=[
                pl.BlockSpec((BN, Pd), lambda i: (0, 0)),
                pl.BlockSpec((Pd, D), lambda i: (0, 0)),
                pl.BlockSpec((1, D), lambda i: (0, 0)),
                pl.BlockSpec((R, BN), lambda i: (0, 0)),
                pl.BlockSpec((R, 1), lambda i: (0, 0)),
                pl.BlockSpec((D, P), lambda i: (0, 0)),
            ],
            out_specs=pl.BlockSpec((R, P), lambda i: (0, 0)),
        ),
        compiler_params=pltpu.CompilerParams(dimension_semantics=("arbitrary",)),
    )(patches_r, w2, b2, wbd, bbd, pool_t)


# ------------------------------------ glue ------------------------------------------
def _adaptive_avg_matrix(in_size, out_size):
    # Exact PyTorch AdaptiveAvgPool: start = floor(i*in/out), end = ceil((i+1)*in/out)
    m = np.zeros((out_size, in_size), dtype=np.float32)
    for i in range(out_size):
        start = (i * in_size) // out_size
        end = -((-(i + 1) * in_size) // out_size)
        m[i, start:end] = 1.0 / (end - start)
    return jnp.asarray(m)


@jax.jit
def nerv3d_encoder_forward(x, params):
    """x: (B, 3, T, H, W) float32, NCTHW exactly like the PyTorch module input."""
    Bq = x.shape[0]

    # ---- encoder.forward_features stand-in: tubelet (Conv3d stride=kernel) patch embed ----
    # TODO(synk): the full VideoMAE ViT-L transformer stack (vit_large_patch16_224 +
    # load_state_dict) is external to the provided source; only the patch-embed
    # projection hot path of forward_features is implemented here.
    xp = x.reshape(Bq, IN_CH, HIDDEN_T, TUBELET, HIDDEN_H, PATCH, HIDDEN_W, PATCH)
    xp = xp.transpose(0, 2, 4, 6, 1, 3, 5, 7)              # (B, t, h, w, c, dt, dh, dw)
    patches = xp.reshape(Bq, N_TOKENS, PATCH_DIM)          # rows per batch ordered by token n

    # PyTorch does feats.reshape(B, hidden, t, h, w): per batch, token n -> (c, t) with
    # n = c*T + t and hidden channel d -> (h, w). Pre-permute the patch rows to (b, t, c)
    # so the fused kernel's proj sees contiguous per-(b, t) channel blocks. This extra
    # permutation fuses with the patchify transpose under jit (single XLA pass).
    c_new = N_TOKENS // HIDDEN_T                           # == HIDDEN_DIM
    pr = patches.reshape(Bq, c_new, HIDDEN_T, PATCH_DIM).transpose(0, 2, 1, 3)
    pr = pr.reshape(Bq * HIDDEN_T * c_new, PATCH_DIM)      # (B*T*C, patch_dim)

    # Patch-embed (Conv3d k=stride=(tubelet,p,p)) weights as a plain matmul.
    w2 = params["patch_w"].reshape(HIDDEN_DIM, PATCH_DIM).T      # (patch_dim, hidden_dim)
    b2 = params["patch_b"].reshape(1, HIDDEN_DIM)

    # proj[0] = Conv3d(hidden->embed, k=1): block-diagonal weight over all (b, t) blocks.
    wpt = params["proj_w"].reshape(EMBED_DIM, HIDDEN_DIM)        # (E, C)
    wbd = jnp.kron(jnp.eye(Bq * HIDDEN_T, dtype=wpt.dtype), wpt)  # (B*T*E, B*T*C)
    bbd = jnp.tile(params["proj_b"], (Bq * HIDDEN_T,)).reshape(Bq * HIDDEN_T * EMBED_DIM, 1)

    # AdaptiveAvgPool3d((hidden_t, eh, ew)): temporal pooling is identity here; spatial
    # pooling is the separable kron(P_h, P_w), applied as one matmul inside the kernel.
    ph = _adaptive_avg_matrix(HIDDEN_H, EMBED_H)
    pw = _adaptive_avg_matrix(HIDDEN_W, EMBED_W)
    pool_t = jnp.kron(ph, pw).T                                   # (h*w, eh*ew)

    out = nerv3d_fused(pr, w2, b2, wbd, bbd, pool_t)              # (B*T*E, eh*ew), rows (b,t,e)
    out = out.reshape(Bq, HIDDEN_T, EMBED_DIM, EMBED_H, EMBED_W)  # 128 elems: trivial plumbing
    return out.transpose(0, 2, 1, 3, 4)                           # (B, embed_dim, T, eh, ew) NCTHW


def reference_forward(x, params):
    """Pure-jnp reference with identical semantics, for a sanity check."""
    Bq = x.shape[0]
    xp = x.reshape(Bq, IN_CH, HIDDEN_T, TUBELET, HIDDEN_H, PATCH, HIDDEN_W, PATCH)
    xp = xp.transpose(0, 2, 4, 6, 1, 3, 5, 7).reshape(Bq, N_TOKENS, PATCH_DIM)
    w2 = params["patch_w"].reshape(HIDDEN_DIM, PATCH_DIM)
    feats = jnp.einsum("bnp,dp->bnd", xp, w2) + params["patch_b"]
    f5 = feats.reshape(Bq, HIDDEN_DIM, HIDDEN_T, HIDDEN_H, HIDDEN_W)
    wp = params["proj_w"].reshape(EMBED_DIM, HIDDEN_DIM)
    y = jnp.einsum("bcthw,ec->bethw", f5, wp) + params["proj_b"][None, :, None, None, None]
    y = jax.nn.gelu(y, approximate=False)
    ph = _adaptive_avg_matrix(HIDDEN_H, EMBED_H)
    pw = _adaptive_avg_matrix(HIDDEN_W, EMBED_W)
    y = jnp.einsum("ih,bethw->betiw", ph, y)
    y = jnp.einsum("jw,betiw->betij", pw, y)
    return y


if __name__ == "__main__":
    key = jax.random.PRNGKey(0)
    k1, k2, k3, k4, k5 = jax.random.split(key, 5)

    x = jax.random.normal(k1, (B, IN_CH, FRAME_INTERVAL, IMG_H, IMG_W), jnp.float32)
    params = {
        # Conv3d(3, hidden_dim, kernel=(tubelet, p, p), stride=same) of encoder.patch_embed
        "patch_w": 0.05 * jax.random.normal(
            k2, (HIDDEN_DIM, IN_CH, TUBELET, PATCH, PATCH), jnp.float32),
        "patch_b": 0.01 * jax.random.normal(k3, (HIDDEN_DIM,), jnp.float32),
        # proj[0] = Conv3d(hidden_dim, embed_dim, kernel_size=1)
        "proj_w": 0.1 * jax.random.normal(
            k4, (EMBED_DIM, HIDDEN_DIM, 1, 1, 1), jnp.float32),
        "proj_b": 0.01 * jax.random.normal(k5, (EMBED_DIM,), jnp.float32),
    }

    out = jax.block_until_ready(nerv3d_encoder_forward(x, params))
    ref = jax.block_until_ready(reference_forward(x, params))

    assert out.shape == (B, EMBED_DIM, HIDDEN_T, EMBED_H, EMBED_W), out.shape
    assert np.allclose(np.asarray(out), np.asarray(ref), rtol=1e-4, atol=1e-4)

    print("KERNEL_OK")
</pallas_src>

<mosaic_0001>
module attributes {stable_mosaic.version = 11 : i64} {
  func.func @_nerv3d_fused_kernel(%arg0: i32, %arg1: memref<64x384xf32, #tpu.memory_space<vmem>>, %arg2: memref<384x16xf32, #tpu.memory_space<vmem>>, %arg3: memref<1x16xf32, #tpu.memory_space<vmem>>, %arg4: memref<32x64xf32, #tpu.memory_space<vmem>>, %arg5: memref<32x1xf32, #tpu.memory_space<vmem>>, %arg6: memref<16x4xf32, #tpu.memory_space<vmem>>, %arg7: memref<32x4xf32, #tpu.memory_space<vmem>>) attributes {dimension_semantics = [#tpu.dimension_semantics<arbitrary>], iteration_bounds = array<i64: 1>, scalar_prefetch = 0 : i64, scratch_operands = 0 : i64, tpu.core_type = #tpu.core_type<tc>, window_params = [{pipeline_mode = #tpu.pipeline_mode<synchronous>, transform_indices = @transform_0, window_bounds = array<i64: 64, 384>}, {pipeline_mode = #tpu.pipeline_mode<synchronous>, transform_indices = @transform_1, window_bounds = array<i64: 384, 16>}, {pipeline_mode = #tpu.pipeline_mode<synchronous>, transform_indices = @transform_2, window_bounds = array<i64: 1, 16>}, {pipeline_mode = #tpu.pipeline_mode<synchronous>, transform_indices = @transform_3, window_bounds = array<i64: 32, 64>}, {pipeline_mode = #tpu.pipeline_mode<synchronous>, transform_indices = @transform_4, window_bounds = array<i64: 32, 1>}, {pipeline_mode = #tpu.pipeline_mode<synchronous>, transform_indices = @transform_5, window_bounds = array<i64: 16, 4>}, {pipeline_mode = #tpu.pipeline_mode<synchronous>, transform_indices = @transform_6, window_bounds = array<i64: 32, 4>}]} {
    %c0 = arith.constant 0 : index
    %c0_0 = arith.constant 0 : index
    %0 = vector.load %arg1[%c0, %c0_0] : memref<64x384xf32, #tpu.memory_space<vmem>>, vector<64x384xf32>
    %c0_1 = arith.constant 0 : index
    %c0_2 = arith.constant 0 : index
    %1 = vector.load %arg2[%c0_1, %c0_2] : memref<384x16xf32, #tpu.memory_space<vmem>>, vector<384x16xf32>
    %cst = arith.constant dense<0.000000e+00> : vector<64x16xf32>
    %2 = tpu.matmul %0, %1, %cst {dimension_numbers = #tpu.dot_dimension_numbers<[1], [0], [0], [1], [0, 0, 1, 1], [], []>} : vector<64x384xf32>, vector<384x16xf32>, vector<64x16xf32> -> vector<64x16xf32>
    %c0_3 = arith.constant 0 : index
    %c0_4 = arith.constant 0 : index
    %3 = vector.load %arg3[%c0_3, %c0_4] : memref<1x16xf32, #tpu.memory_space<vmem>>, vector<1x16xf32>
    %4 = vector.broadcast %3 : vector<1x16xf32> to vector<64x16xf32>
    %5 = arith.addf %2, %4 : vector<64x16xf32>
    %c0_5 = arith.constant 0 : index
    %c0_6 = arith.constant 0 : index
    %6 = vector.load %arg4[%c0_5, %c0_6] : memref<32x64xf32, #tpu.memory_space<vmem>>, vector<32x64xf32>
    %cst_7 = arith.constant dense<0.000000e+00> : vector<32x16xf32>
    %7 = tpu.matmul %6, %5, %cst_7 {dimension_numbers = #tpu.dot_dimension_numbers<[1], [0], [0], [1], [0, 0, 1, 1], [], []>} : vector<32x64xf32>, vector<64x16xf32>, vector<32x16xf32> -> vector<32x16xf32>
    %c0_8 = arith.constant 0 : index
    %c0_9 = arith.constant 0 : index
    %8 = vector.load %arg5[%c0_8, %c0_9] : memref<32x1xf32, #tpu.memory_space<vmem>>, vector<32x1xf32>
    %9 = vector.broadcast %8 : vector<32x1xf32> to vector<32x16xf32>
    %10 = arith.addf %7, %9 : vector<32x16xf32>
    %cst_10 = arith.constant 5.000000e-01 : f32
    %11 = vector.broadcast %cst_10 : f32 to vector<32x16xf32>
    %12 = arith.mulf %11, %10 : vector<32x16xf32>
    %cst_11 = arith.constant 0.707106769 : f32
    %13 = vector.broadcast %cst_11 : f32 to vector<32x16xf32>
    %14 = arith.mulf %10, %13 : vector<32x16xf32>
    %15 = math.erf %14 : vector<32x16xf32>
    %cst_12 = arith.constant 1.000000e+00 : f32
    %16 = vector.broadcast %cst_12 : f32 to vector<32x16xf32>
    %17 = arith.addf %16, %15 : vector<32x16xf32>
    %18 = arith.mulf %12, %17 : vector<32x16xf32>
    %c0_13 = arith.constant 0 : index
    %c0_14 = arith.constant 0 : index
    %19 = vector.load %arg6[%c0_13, %c0_14] : memref<16x4xf32, #tpu.memory_space<vmem>>, vector<16x4xf32>
    %cst_15 = arith.constant dense<0.000000e+00> : vector<32x4xf32>
    %20 = tpu.matmul %18, %19, %cst_15 {dimension_numbers = #tpu.dot_dimension_numbers<[1], [0], [0], [1], [0, 0, 1, 1], [], []>} : vector<32x16xf32>, vector<16x4xf32>, vector<32x4xf32> -> vector<32x4xf32>
    %c0_16 = arith.constant 0 : index
    %c0_17 = arith.constant 0 : index
    %21 = vector.load %arg7[%c0_16, %c0_17] : memref<32x4xf32, #tpu.memory_space<vmem>>, vector<32x4xf32>
    tpu.vector_store %arg7[%c0_16, %c0_17], %20 {strides = array<i32>} : memref<32x4xf32, #tpu.memory_space<vmem>>, vector<32x4xf32>,
    return
  }
  func.func @transform_0(%arg0: i32) -> (i32, i32) {
    %c0_i32 = arith.constant 0 : i32
    %c0_i32_0 = arith.constant 0 : i32
    %c0_i32_1 = arith.constant 0 : i32
    return %c0_i32, %c0_i32_0 : i32, i32
  }
  func.func @transform_1(%arg0: i32) -> (i32, i32) {
    %c0_i32 = arith.constant 0 : i32
    %c0_i32_0 = arith.constant 0 : i32
    %c0_i32_1 = arith.constant 0 : i32
    return %c0_i32, %c0_i32_0 : i32, i32
  }
  func.func @transform_2(%arg0: i32) -> (i32, i32) {
    %c0_i32 = arith.constant 0 : i32
    %c0_i32_0 = arith.constant 0 : i32
    %c0_i32_1 = arith.constant 0 : i32
    return %c0_i32, %c0_i32_0 : i32, i32
  }
  func.func @transform_3(%arg0: i32) -> (i32, i32) {
    %c0_i32 = arith.constant 0 : i32
    %c0_i32_0 = arith.constant 0 : i32
    %c0_i32_1 = arith.constant 0 : i32
    return %c0_i32, %c0_i32_0 : i32, i32
  }
  func.func @transform_4(%arg0: i32) -> (i32, i32) {
    %c0_i32 = arith.constant 0 : i32
    %c0_i32_0 = arith.constant 0 : i32
    %c0_i32_1 = arith.constant 0 : i32
    return %c0_i32, %c0_i32_0 : i32, i32
  }
  func.func @transform_5(%arg0: i32) -> (i32, i32) {
    %c0_i32 = arith.constant 0 : i32
    %c0_i32_0 = arith.constant 0 : i32
    %c0_i32_1 = arith.constant 0 : i32
    return %c0_i32, %c0_i32_0 : i32, i32
  }
  func.func @transform_6(%arg0: i32) -> (i32, i32) {
    %c0_i32 = arith.constant 0 : i32
    %c0_i32_0 = arith.constant 0 : i32
    %c0_i32_1 = arith.constant 0 : i32
    return %c0_i32, %c0_i32_0 : i32, i32
  }
}

</mosaic_0001>

<bundles_post_ra>
// kernel: tile.8
= control target key start
LH: loop header
LB: loop body
LE: loop exit
PB: predicated region body
PF: predicated region fallthrough
CT: control target
= control target key end

     0   :  { %s22_s0 = inlined_call_operand.vmem [shape: f32[8], index: 0, kind: input, shape index: {}]   ;;  %s23_s1 = inlined_call_operand.vmem [shape: f32[4,8], index: 1, kind: output, shape index: {}]  }
   0x1   :  { %v4_v0 = vld [vmem:[%s22_s0] ss:$0 sm:$0xff] }
   0x2   :  { %5 = vst [vmem:[%s23_s1] sm:$0xf] %v4_v0 }

// kernel: tile.0
= control target key start
LH: loop header
LB: loop body
LE: loop exit
PB: predicated region body
PF: predicated region fallthrough
CT: control target
= control target key end

     0   :  { %s66_s8 = smov 125   ;;  %vm7_vm0 = vcmask 7168   ;;  %s67_s11 = smov 126   ;;  %s117_s0 = inlined_call_operand.vmem [shape: f32[4,8], index: 0, kind: input, shape index: {}]   ;;  %s118_s1 = inlined_call_operand.vmem [shape: f32[32,1], index: 1, kind: output, shape index: {}]  }
   0x1   :  { %v4_v0 = vld [vmem:[%s117_s0] sm:$0xf]  ;;  %s65_s0 = smov 127   ;;  %s68_s12 = smov 124  }
   0x2   :  { %5 = vst [vmem:[#allocation0] sm:$0xf] %v4_v0  ;;  %s69_s13 = smov 123   ;;  %s70_s14 = smov 122  }
   0x3   :  { %s71_s15 = smov 121  }
   0x9   :  { %v9_v1 = vld [vmem:[#allocation0] sm:$0xf]  }
   0xa   :  { %v21_v2 = vld [vmem:[#allocation0] sm:$0xf]   ;;  %10 = vrot.lane.b32.xlu0 %v9_v1, %s65_s0 }
   0xb   :  { %22 = vrot.lane.b32.xlu1 %v21_v2, %s66_s8  ;;  %v15_v3 = vld [vmem:[#allocation0] sm:$0xf]  }
   0xc   :  { %v27_v4 = vld [vmem:[#allocation0] sm:$0xf]  }
   0xd   :  { %v6_v5 = vld [vmem:[#allocation0] sm:$0xf]  }
   0xe   :  { %8 = vst.msk [vmem:[%s118_s1] ss:$8 sm:$0xf] %vm7_vm0, %v6_v5   ;;  %16 = vrot.lane.b32.xlu0 %v15_v3, %s67_s11  ;;  %v33_v6 = vld [vmem:[#allocation0] sm:$0xf]  }
   0xf   :  { %28 = vrot.lane.b32.xlu1 %v27_v4, %s68_s12  ;;  %v39_v7 = vld [vmem:[#allocation0] sm:$0xf]  }
  0x10   :  { %v45_v8 = vld [vmem:[#allocation0] sm:$0xf]  }
  0x12   :  { %34 = vrot.lane.b32.xlu0 %v33_v6, %s69_s13 }
  0x13   :  { %40 = vrot.lane.b32.xlu1 %v39_v7, %s70_s14 }
  0x16   :  { %46 = vrot.lane.b32.xlu0 %v45_v8, %s71_s15 }
  0x7c   :  { %v11_v9 = vpop.permute.xlu0 %10  }
  0x7d   :  { %v23_v10 = vpop.permute.xlu1 %22   ;;  %51 = vst.msk [vmem:[%s118_s1 + $0x1] ss:$8 sm:$0xf] %vm7_vm0, %v11_v9  }
  0x7e   :  { %53 = vst.msk [vmem:[%s118_s1 + $0x3] ss:$8 sm:$0xf] %vm7_vm0, %v23_v10  }
  0x80   :  { %v17_v11 = vpop.permute.xlu0 %16  }
  0x81   :  { %v29_v12 = vpop.permute.xlu1 %28   ;;  %52 = vst.msk [vmem:[%s118_s1 + $0x2] ss:$8 sm:$0xf] %vm7_vm0, %v17_v11  }
  0x82   :  { %54 = vst.msk [vmem:[%s118_s1 + $0x4] ss:$8 sm:$0xf] %vm7_vm0, %v29_v12  }
  0x84   :  { %v35_v13 = vpop.permute.xlu0 %34  }
  0x85   :  { %v41_v14 = vpop.permute.xlu1 %40   ;;  %55 = vst.msk [vmem:[%s118_s1 + $0x5] ss:$8 sm:$0xf] %vm7_vm0, %v35_v13  }
  0x86   :  { %56 = vst.msk [vmem:[%s118_s1 + $0x6] ss:$8 sm:$0xf] %vm7_vm0, %v41_v14  }
  0x88   :  { %v47_v15 = vpop.permute.xlu0 %46  }
  0x89   :  { %57 = vst.msk [vmem:[%s118_s1 + $0x7] ss:$8 sm:$0xf] %vm7_vm0, %v47_v15  }

// kernel: nerv3d_encoder_forward.1
= control target key start
LH: loop header
LB: loop body
LE: loop exit
PB: predicated region body
PF: predicated region fallthrough
CT: control target
= control target key end

     0   :  { %vm340_vm0 = vcmask 523264   ;;  %vm460_vm1 = vcmask 130048   ;;  %vm558_vm2 = vcmask 31744   ;;  %s1146_s1 = inlined_call_operand.vmem [shape: f32[384,16], index: 1, kind: input, shape index: {}]   ;;  %s1147_s0 = inlined_call_operand.vmem [shape: f32[64,384], index: 0, kind: input, shape index: {}]   ;;  %s1148_s3 = inlined_call_operand.vmem [shape: f32[32,64], index: 3, kind: input, shape index: {}]   ;;  %s1149_s4 = inlined_call_operand.vmem [shape: f32[32,1], index: 4, kind: input, shape index: {}]   ;;  %s1150_s2 = inlined_call_operand.vmem [shape: f32[1,16], index: 2, kind: input, shape index: {}]   ;;  %s1151_s5 = inlined_call_operand.vmem [shape: f32[16,4], index: 5, kind: input, shape index: {}]   ;;  %s1152_s6 = inlined_call_operand.vmem [shape: f32[32,4], index: 6, kind: output, shape index: {}]  }
   0x1   :  { %v63_v0 = vld [vmem:[%s1146_s1 + $0x80] sm:$0xff]  ;;  %v64_v1 = vld [vmem:[%s1146_s1 + $0x88] sm:$0xff]  ;;  %v65_v5 = vld [vmem:[%s1146_s1 + $0x90] sm:$0xff] }
   0x2   :  { %v47_v2 = vld [vmem:[%s1146_s1] sm:$0xff]  ;;  %v750_v3 = vpack.c.bf16 %v64_v1, %v63_v0  ;;  %v48_v4 = vld [vmem:[%s1146_s1 + $0x8] sm:$0xff]  ;;  %v66_v6 = vld [vmem:[%s1146_s1 + $0x98] sm:$0xff] }
   0x3   :  { %v752_v7 = vpack.c.bf16 %v48_v4, %v47_v2  ;;  %v754_v8 = vpack.c.bf16 %v66_v6, %v65_v5  ;;  %v79_v9 = vld [vmem:[%s1146_s1 + $0x100] sm:$0xff]  ;;  %v80_v10 = vld [vmem:[%s1146_s1 + $0x108] sm:$0xff]  ;;  %v49_v11 = vld [vmem:[%s1146_s1 + $0x10] sm:$0xff] }
   0x4   :  { %751 = vmatprep.subr.bf16.mxu0 %v750_v3  ;;  %v782_v12 = vpack.c.bf16 %v80_v10, %v79_v9  ;;  %v50_v13 = vld [vmem:[%s1146_s1 + $0x18] sm:$0xff]  ;;  %v67_v14 = vld [vmem:[%s1146_s1 + $0xa0] sm:$0xff]  ;;  %v68_v15 = vld [vmem:[%s1146_s1 + $0xa8] sm:$0xff] }
   0x5   :  { %753 = vmatpush3.bf16.msra.mxu0 %v752_v7  ;;  %v756_v16 = vpack.c.bf16 %v50_v13, %v49_v11  ;;  %v81_v17 = vld [vmem:[%s1146_s1 + $0x110] sm:$0xff]  ;;  %v82_v18 = vld [vmem:[%s1146_s1 + $0x118] sm:$0xff]  ;;  %v758_v19 = vpack.c.bf16 %v68_v15, %v67_v14  ;;  %v51_v21 = vld [vmem:[%s1146_s1 + $0x20] sm:$0xff] }
   0x6   :  { %755 = vmatprep.subr.bf16.mxu0 %v754_v8  ;;  %783 = vmatprep.subr.bf16.mxu1 %v782_v12  ;;  %v786_v20 = vpack.c.bf16 %v82_v18, %v81_v17  ;;  %v52_v22 = vld [vmem:[%s1146_s1 + $0x28] sm:$0xff]  ;;  %v69_v23 = vld [vmem:[%s1146_s1 + $0xb0] sm:$0xff]  ;;  %v70_v24 = vld [vmem:[%s1146_s1 + $0xb8] sm:$0xff] }
   0x7   :  { %785 = vmatpush3.bf16.msra.mxu1 %v782_v12  ;;  %v83_v25 = vld [vmem:[%s1146_s1 + $0x120] sm:$0xff]  ;;  %v84_v26 = vld [vmem:[%s1146_s1 + $0x128] sm:$0xff]  ;;  %v760_v28 = vpack.c.bf16 %v52_v22, %v51_v21  ;;  %v85_v29 = vld [vmem:[%s1146_s1 + $0x130] sm:$0xff]  ;;  %v762_v31 = vpack.c.bf16 %v70_v24, %v69_v23 }
   0x8   :  { %787 = vmatprep.subr.bf16.mxu1 %v786_v20  ;;  %v790_v27 = vpack.c.bf16 %v84_v26, %v83_v25  ;;  %v86_v30 = vld [vmem:[%s1146_s1 + $0x138] sm:$0xff]  ;;  %v53_v32 = vld [vmem:[%s1146_s1 + $0x30] sm:$0xff]  ;;  %v71_v34 = vld [vmem:[%s1146_s1 + $0xc0] sm:$0xff] }
   0x9   :  { %757 = vmatpush3.bf16.msra.mxu0 %v756_v16  ;;  %v54_v33 = vld [vmem:[%s1146_s1 + $0x38] sm:$0xff]  ;;  %v72_v35 = vld [vmem:[%s1146_s1 + $0xc8] sm:$0xff]  ;;  %v794_v36 = vpack.c.bf16 %v86_v30, %v85_v29  ;;  %v87_v38 = vld [vmem:[%s1146_s1 + $0x140] sm:$0xff] }
   0xa   :  { %759 = vmatprep.subr.bf16.mxu0 %v758_v19  ;;  %v764_v37 = vpack.c.bf16 %v54_v33, %v53_v32  ;;  %v88_v39 = vld [vmem:[%s1146_s1 + $0x148] sm:$0xff]  ;;  %v766_v40 = vpack.c.bf16 %v72_v35, %v71_v34  ;;  %v55_v41 = vld [vmem:[%s1146_s1 + $0x40] sm:$0xff]  ;;  %v73_v43 = vld [vmem:[%s1146_s1 + $0xd0] sm:$0xff]  ;;  %v845_v33 = vmov 0  }
   0xb   :  { %789 = vmatpush3.bf16.msra.mxu1 %v786_v20  ;;  %v56_v42 = vld [vmem:[%s1146_s1 + $0x48] sm:$0xff]  ;;  %v74_v44 = vld [vmem:[%s1146_s1 + $0xd8] sm:$0xff]  ;;  %v798_v45 = vpack.c.bf16 %v88_v39, %v87_v38  ;;  %v89_v48 = vld [vmem:[%s1146_s1 + $0x150] sm:$0xff]  ;;  %835 = vset.pattern.permute.xlu0 %v845_v33 }
   0xc   :  { %791 = vmatprep.subr.bf16.mxu1 %v790_v27  ;;  %v24_v46 = vld [vmem:[%s1147_s0 + $0x8] sm:$0xff]  ;;  %v768_v47 = vpack.c.bf16 %v56_v42, %v55_v41  ;;  %v90_v49 = vld [vmem:[%s1146_s1 + $0x158] sm:$0xff]  ;;  %v770_v50 = vpack.c.bf16 %v74_v44, %v73_v43  ;;  %v57_v51 = vld [vmem:[%s1146_s1 + $0x50] sm:$0xff]  ;;  %836 = vset.pattern.permute.xlu1 %v845_v33 }
   0xd   :  { %761 = vmatpush3.bf16.msra.mxu0 %v760_v28  ;;  %166 = vmatprep.mubr.f32.mxu0 %v24_v46  ;;  %v58_v52 = vld [vmem:[%s1146_s1 + $0x58] sm:$0xff]  ;;  %v25_v53 = vld [vmem:[%s1147_s0 + $0x10] sm:$0xff]  ;;  %v75_v54 = vld [vmem:[%s1146_s1 + $0xe0] sm:$0xff]  ;;  %v802_v56 = vpack.c.bf16 %v90_v49, %v89_v48 }
   0xe   :  { %763 = vmatprep.subr.bf16.mxu0 %v762_v31  ;;  %v76_v55 = vld [vmem:[%s1146_s1 + $0xe8] sm:$0xff]  ;;  %706 = vmatprep.mubr.f32.mxu1 %v25_v53  ;;  %v772_v57 = vpack.c.bf16 %v58_v52, %v57_v51  ;;  %v91_v58 = vld [vmem:[%s1146_s1 + $0x160] sm:$0xff]  ;;  %v77_v63 = vld [vmem:[%s1146_s1 + $0xf0] sm:$0xff] }
   0xf   :  { %793 = vmatpush3.bf16.msra.mxu1 %v790_v27  ;;  %v92_v59 = vld [vmem:[%s1146_s1 + $0x168] sm:$0xff]  ;;  %v774_v60 = vpack.c.bf16 %v76_v55, %v75_v54  ;;  %v59_v61 = vld [vmem:[%s1146_s1 + $0x60] sm:$0xff]  ;;  %v78_v0 = vld [vmem:[%s1146_s1 + $0xf8] sm:$0xff] }
  0x10   :  { %795 = vmatprep.subr.bf16.mxu1 %v794_v36  ;;  %v60_v62 = vld [vmem:[%s1146_s1 + $0x68] sm:$0xff]  ;;  %v806_v1 = vpack.c.bf16 %v92_v59, %v91_v58  ;;  %v93_v3 = vld [vmem:[%s1146_s1 + $0x170] sm:$0xff]  ;;  %v94_v4 = vld [vmem:[%s1146_s1 + $0x178] sm:$0xff]  ;;  %v778_v5 = vpack.c.bf16 %v78_v0, %v77_v63 }
  0x11   :  { %765 = vmatpush3.bf16.msra.mxu0 %v764_v37  ;;  %v776_v2 = vpack.c.bf16 %v60_v62, %v59_v61  ;;  %v61_v6 = vld [vmem:[%s1146_s1 + $0x70] sm:$0xff]  ;;  %v62_v7 = vld [vmem:[%s1146_s1 + $0x78] sm:$0xff]  ;;  %v810_v8 = vpack.c.bf16 %v94_v4, %v93_v3  ;;  %v23_v10 = vld [vmem:[%s1147_s0] sm:$0xff] }
  0x12   :  { %767 = vmatprep.subr.bf16.mxu0 %v766_v40  ;;  %v780_v9 = vpack.c.bf16 %v62_v7, %v61_v6  ;;  %v27_v11 = vld [vmem:[%s1147_s0 + $0x20] sm:$0xff]  ;;  %v28_v12 = vld [vmem:[%s1147_s0 + $0x28] sm:$0xff]  ;;  %v26_v14 = vld [vmem:[%s1147_s0 + $0x18] sm:$0xff] }
  0x13   :  { %797 = vmatpush3.bf16.msra.mxu1 %v794_v36  ;;  %v31_v13 = vld [vmem:[%s1147_s0 + $0x40] sm:$0xff]  ;;  %v30_v15 = vld [vmem:[%s1147_s0 + $0x38] sm:$0xff]  ;;  %v37_v17 = vld [vmem:[%s1147_s0 + $0x70] sm:$0xff] }
  0x14   :  { %799 = vmatprep.subr.bf16.mxu1 %v798_v45  ;;  %v34_v16 = vld [vmem:[%s1147_s0 + $0x58] sm:$0xff]  ;;  %v29_v18 = vld [vmem:[%s1147_s0 + $0x30] sm:$0xff]  ;;  %v40_v20 = vld [vmem:[%s1147_s0 + $0x88] sm:$0xff] }
  0x15   :  { %769 = vmatpush3.bf16.msra.mxu0 %v768_v47  ;;  %v33_v19 = vld [vmem:[%s1147_s0 + $0x50] sm:$0xff]  ;;  %v43_v21 = vld [vmem:[%s1147_s0 + $0xa0] sm:$0xff]  ;;  %v32_v22 = vld [vmem:[%s1147_s0 + $0x48] sm:$0xff] }
  0x16   :  { %771 = vmatprep.subr.bf16.mxu0 %v770_v50  ;;  %v36_v23 = vld [vmem:[%s1147_s0 + $0x68] sm:$0xff]  ;;  %v46_v24 = vld [vmem:[%s1147_s0 + $0xb8] sm:$0xff]  ;;  %v35_v25 = vld [vmem:[%s1147_s0 + $0x60] sm:$0xff] }
  0x17   :  { %801 = vmatpush3.bf16.msra.mxu1 %v798_v45  ;;  %v39_v26 = vld [vmem:[%s1147_s0 + $0x80] sm:$0xff]  ;;  %v38_v27 = vld [vmem:[%s1147_s0 + $0x78] sm:$0xff]  ;;  %v41_v29 = vld [vmem:[%s1147_s0 + $0x90] sm:$0xff] }
  0x18   :  { %803 = vmatprep.subr.bf16.mxu1 %v802_v56  ;;  %v42_v28 = vld [vmem:[%s1147_s0 + $0x98] sm:$0xff]  ;;  %v45_v30 = vld [vmem:[%s1147_s0 + $0xb0] sm:$0xff]  ;;  %v44_v31 = vld [vmem:[%s1147_s0 + $0xa8] sm:$0xff] }
  0x19   :  { %773 = vmatpush3.bf16.msra.mxu0 %v772_v57  ;;  %v312_v32 = vld [vmem:[%s1148_s3] sm:$0xff]  ;;  %v318_v35 = vld [vmem:[%s1149_s4 + $0x10] sm:$0xff]  ;;  %v317_v36 = vld [vmem:[%s1149_s4 + $0x8] sm:$0xff] }
  0x1a   :  { %775 = vmatprep.subr.bf16.mxu0 %v774_v60  ;;  %v316_v34 = vld [vmem:[%s1149_s4] sm:$0xff]  ;;  %332 = vperm.xlu1 %836, %v318_v35   ;;  %v319_v37 = vld [vmem:[%s1149_s4 + $0x18] sm:$0xff] }
  0x1b   :  { %805 = vmatpush3.bf16.msra.mxu1 %v802_v56  ;;  %322 = vperm.xlu0 %835, %v316_v34   ;;  %v567_v40 = vld [vmem:[%s1150_s2] ss:$0 sm:$0xff] }
  0x1c   :  { %807 = vmatprep.subr.bf16.mxu1 %v806_v1 }
  0x1d   :  { %777 = vmatpush3.bf16.msra.mxu0 %v776_v2 }
  0x1e   :  { %779 = vmatprep.subr.bf16.mxu0 %v778_v5  ;;  %337 = vperm.xlu1 %836, %v319_v37  }
  0x1f   :  { %809 = vmatpush3.bf16.msra.mxu1 %v806_v1  ;;  %327 = vperm.xlu0 %835, %v317_v36  }
  0x20   :  { %811 = vmatprep.subr.bf16.mxu1 %v810_v8 }
  0x21   :  { %781 = vmatpush3.bf16.msra.mxu0 %v780_v9 }
  0x23   :  { %813 = vmatpush3.bf16.msra.mxu1 %v810_v8 }
  0x24   :  { %167 = vmatmul.mubr.f32.vlgmr.msra.gmra.mrb[0].mxu0 %v23_v10 }
  0x25   :  { %171 = vmatprep.mubr.f32.mxu0 %v27_v11 }
  0x26   :  { %707 = vmatmul.mubr.f32.vlgmr.msra.gmra.mrb[0].mxu1 %v28_v12 }
  0x27   :  { %709 = vmatprep.mubr.f32.mxu1 %v31_v13 }
  0x28   :  { %172 = vmatmul.mubr.f32.gmra.mrb[2].mxu0 %v26_v14 }
  0x29   :  { %176 = vmatprep.mubr.f32.mxu0 %v30_v15 }
  0x2a   :  { %710 = vmatmul.mubr.f32.gmra.mrb[2].mxu1 %v34_v16 }
  0x2b   :  { %712 = vmatprep.mubr.f32.mxu1 %v37_v17 }
  0x2c   :  { %177 = vmatmul.mubr.f32.gmra.mrb[4].mxu0 %v29_v18 }
  0x2d   :  { %181 = vmatprep.mubr.f32.mxu0 %v33_v19 }
  0x2e   :  { %713 = vmatmul.mubr.f32.gmra.mrb[4].mxu1 %v40_v20 }
  0x2f   :  { %715 = vmatprep.mubr.f32.mxu1 %v43_v21 }
  0x30   :  { %182 = vmatmul.mubr.f32.gmra.mrb[6].mxu0 %v32_v22 }
  0x31   :  { %186 = vmatprep.mubr.f32.mxu0 %v36_v23 }
  0x32   :  { %716 = vmatmul.mubr.f32.gmra.mrb[6].mxu1 %v46_v24 }
  0x33   :  { %734 = vmatprep.mubr.msk.f32.mxu1 %vm340_vm0, %v312_v32 }
  0x34   :  { %187 = vmatmul.mubr.f32.gmra.mrb[8].mxu0 %v35_v25 }
  0x35   :  { %191 = vmatprep.mubr.f32.mxu0 %v39_v26 }
  0x38   :  { %192 = vmatmul.mubr.f32.gmra.mrb[10].mxu0 %v38_v27  ;;  %v313_v27 = vld [vmem:[%s1148_s3 + $0x8] sm:$0xff] }
  0x39   :  { %196 = vmatprep.mubr.f32.mxu0 %v42_v28  ;;  %v314_v28 = vld [vmem:[%s1148_s3 + $0x10] sm:$0xff] }
  0x3c   :  { %197 = vmatmul.mubr.f32.gmra.mrb[12].mxu0 %v41_v29  ;;  %v315_v29 = vld [vmem:[%s1148_s3 + $0x18] sm:$0xff] }
  0x3d   :  { %201 = vmatprep.mubr.f32.mxu0 %v45_v30  ;;  %v458_v30 = vld [vmem:[%s1151_s5] sm:$0xff] }
  0x40   :  { %202 = vmatmul.mubr.f32.gmra.mrb[14].mxu0 %v44_v31  ;;  %v459_v31 = vld [vmem:[%s1151_s5 + $0x8] sm:$0xff] }
  0x41   :  { %v830_v32 = vpack.c.bf16 %v459_v31, %v458_v30 }
  0x99   :  { %v333_v34 = vpop.permute.xlu1 %332 }
  0x9a   :  { %v323_v33 = vpop.permute.xlu0 %322 }
  0x9e   :  { %v328_v35 = vpop.permute.xlu0 %327 }
  0xf7   :  { %v608_v38 = vpop.f32.mrb[0].mxu0 }
  0xf8   :  { %v609_v39 = vpop.f32.mrb[1].mxu0 }
  0xf9   :  { %v610_v41 = vadd.f32 %v609_v39, %v608_v38  ;;  %v708_v42 = vpop.f32.mrb[0].mxu1 }
  0xfa   :  { %v273_v43 = vpop.f32.mrb[1].mxu1 }
  0xfb   :  { %v611_v44 = vpop.f32.mrb[2].mxu0  ;;  %v169_v45 = vadd.f32 %v610_v41, %v567_v40 }
  0xfc   :  { %v612_v46 = vpop.f32.mrb[3].mxu0 }
  0xfd   :  { %v613_v47 = vadd.f32 %v612_v46, %v611_v44  ;;  %v274_v48 = vadd.f32 %v273_v43, %v169_v45  ;;  %v711_v49 = vpop.f32.mrb[2].mxu1 }
  0xfe   :  { %v283_v50 = vpop.f32.mrb[3].mxu1 }
  0xff   :  { %v174_v51 = vadd.f32 %v613_v47, %v567_v40  ;;  %v614_v52 = vpop.f32.mrb[4].mxu0 }
 0x100   :  { %v615_v53 = vpop.f32.mrb[5].mxu0 }
 0x101   :  { %v279_v54 = vadd.f32 %v708_v42, %v174_v51  ;;  %v616_v55 = vadd.f32 %v615_v53, %v614_v52  ;;  %v714_v56 = vpop.f32.mrb[4].mxu1  ;;  %v338_v42 = vpop.permute.xlu1 %337 }
 0x102   :  { %v293_v57 = vpop.f32.mrb[5].mxu1 }
 0x103   :  { %v814_v58 = vpack.c.bf16 %v279_v54, %v274_v48  ;;  %v617_v59 = vpop.f32.mrb[6].mxu0  ;;  %v179_v60 = vadd.f32 %v616_v55, %v567_v40 }
 0x104   :  { %v618_v61 = vpop.f32.mrb[7].mxu0 }
 0x105   :  { %v619_v62 = vadd.f32 %v618_v61, %v617_v59  ;;  %v284_v63 = vadd.f32 %v283_v50, %v179_v60  ;;  %815 = vmatprep.subr.bf16.mxu1 %v814_v58  ;;  %v717_v0 = vpop.f32.mrb[6].mxu1 }
 0x106   :  { %817 = vmatpush3.bf16.msra.mxu1 %v814_v58  ;;  %v303_v1 = vpop.f32.mrb[7].mxu1 }
 0x107   :  { %v184_v2 = vadd.f32 %v619_v62, %v567_v40  ;;  %v620_v3 = vpop.f32.mrb[8].mxu0 }
 0x108   :  { %v621_v4 = vpop.f32.mrb[9].mxu0 }
 0x109   :  { %v289_v5 = vadd.f32 %v711_v49, %v184_v2  ;;  %v622_v6 = vadd.f32 %v621_v4, %v620_v3 }
 0x10b   :  { %v818_v7 = vpack.c.bf16 %v289_v5, %v284_v63  ;;  %v623_v8 = vpop.f32.mrb[10].mxu0  ;;  %v189_v9 = vadd.f32 %v622_v6, %v567_v40 }
 0x10c   :  { %v624_v10 = vpop.f32.mrb[11].mxu0 }
 0x10d   :  { %v625_v11 = vadd.f32 %v624_v10, %v623_v8  ;;  %v294_v12 = vadd.f32 %v293_v57, %v189_v9  ;;  %819 = vmatprep.subr.bf16.mxu1 %v818_v7 }
 0x10e   :  { %821 = vmatpush3.bf16.msra.mxu1 %v818_v7 }
 0x10f   :  { %v194_v13 = vadd.f32 %v625_v11, %v567_v40  ;;  %v626_v14 = vpop.f32.mrb[12].mxu0 }
 0x110   :  { %v627_v15 = vpop.f32.mrb[13].mxu0 }
 0x111   :  { %v299_v16 = vadd.f32 %v714_v56, %v194_v13  ;;  %v628_v17 = vadd.f32 %v627_v15, %v626_v14 }
 0x113   :  { %v822_v18 = vpack.c.bf16 %v299_v16, %v294_v12  ;;  %v629_v19 = vpop.f32.mrb[14].mxu0  ;;  %v199_v20 = vadd.f32 %v628_v17, %v567_v40 }
 0x114   :  { %v630_v21 = vpop.f32.mrb[15].mxu0 }
 0x115   :  { %v631_v22 = vadd.f32 %v630_v21, %v629_v19  ;;  %v304_v23 = vadd.f32 %v303_v1, %v199_v20  ;;  %823 = vmatprep.subr.bf16.mxu1 %v822_v18 }
 0x116   :  { %825 = vmatpush3.bf16.msra.mxu1 %v822_v18 }
 0x117   :  { %v204_v24 = vadd.f32 %v631_v22, %v567_v40 }
 0x119   :  { %v309_v25 = vadd.f32 %v717_v0, %v204_v24 }
 0x11b   :  { %v826_v26 = vpack.c.bf16 %v309_v25, %v304_v23 }
 0x11d   :  { %827 = vmatprep.subr.bf16.mxu1 %v826_v26 }
 0x11e   :  { %829 = vmatpush3.bf16.msra.mxu1 %v826_v26 }
 0x11f   :  { %831 = vmatprep.subr.bf16.mxu1 %v830_v32 }
 0x121   :  { %735 = vmatmul.mubr.msk.f32.vlgmr.msra.gmra.mrb[8].mxu1 %vm340_vm0, %v313_v27 }
 0x122   :  { %737 = vmatprep.mubr.msk.f32.mxu1 %vm340_vm0, %v314_v28  ;;  %833 = vmatpush3.bf16.msra.mxu1 %v830_v32 }
 0x125   :  { %738 = vmatmul.mubr.msk.f32.gmra.mrb[10].mxu1 %vm340_vm0, %v315_v29 }
 0x1f4   :  { %v736_v36 = vpop.f32.mrb[8].mxu1 }
 0x1f5   :  { %v425_v37 = vadd.f32 %v736_v36, %v328_v35  ;;  %v419_v38 = vpop.f32.mrb[9].mxu1 }
 0x1f6   :  { %v420_v39 = vadd.f32 %v419_v38, %v323_v33 }
 0x1f7   :  { %v443_v40 = vmul.f32 0.70710677, %v425_v37  ;;  %v439_v54 = vmul.f32 0.5, %v425_v37 }
 0x1f8   :  { %v442_v41 = vmul.f32 0.70710677, %v420_v39  ;;  %v739_v43 = vpop.f32.mrb[10].mxu1  ;;  %v438_v52 = vmul.f32 0.5, %v420_v39 }
 0x1f9   :  { %837 = verf.f32 %v443_v40  ;;  %v435_v44 = vadd.f32 %v739_v43, %v338_v42  ;;  %v429_v45 = vpop.f32.mrb[11].mxu1 }
 0x1fa   :  { %839 = verf.f32 %v442_v41  ;;  %v430_v46 = vadd.f32 %v429_v45, %v333_v34 }
 0x1fb   :  { %v445_v47 = vmul.f32 0.70710677, %v435_v44  ;;  %v441_v62 = vmul.f32 0.5, %v435_v44 }
 0x1fc   :  { %v444_v48 = vmul.f32 0.70710677, %v430_v46  ;;  %v440_v60 = vmul.f32 0.5, %v430_v46 }
 0x1fd   :  { %841 = verf.f32 %v445_v47 }
 0x1fe   :  { %843 = verf.f32 %v444_v48 }
 0x203   :  { %v838_v49 = vpop.eup %837 }
 0x204   :  { %v840_v50 = vpop.eup %839  ;;  %v451_v51 = vadd.f32 1.0, %v838_v49 }
 0x205   :  { %v450_v53 = vadd.f32 1.0, %v840_v50 }
 0x206   :  { %v455_v58 = vmul.f32 %v451_v51, %v439_v54 }
 0x207   :  { %v842_v55 = vpop.eup %841  ;;  %v454_v56 = vmul.f32 %v450_v53, %v438_v52 }
 0x208   :  { %v844_v57 = vpop.eup %843  ;;  %v453_v59 = vadd.f32 1.0, %v842_v55 }
 0x209   :  { %v452_v61 = vadd.f32 1.0, %v844_v57  ;;  %744 = vmatprep.mubr.msk.f32.mxu1 %vm460_vm1, %v454_v56 }
 0x20a   :  { %745 = vmatmul.mubr.msk.f32.vlgmr.msra.gmra.mrb[12].mxu1 %vm460_vm1, %v455_v58  ;;  %v457_v0 = vmul.f32 %v453_v59, %v441_v62 }
 0x20b   :  { %v456_v63 = vmul.f32 %v452_v61, %v440_v60 }
 0x20d   :  { %747 = vmatprep.mubr.msk.f32.mxu1 %vm460_vm1, %v456_v63 }
 0x20e   :  { %748 = vmatmul.mubr.msk.f32.gmra.mrb[14].mxu1 %vm460_vm1, %v457_v0 }
 0x2dd   :  { %v746_v1 = vpop.f32.mrb[12].mxu1 }
 0x2de   :  { %560 = vst.msk [vmem:[%s1152_s6 + $0x8] sm:$0xff] %vm558_vm2, %v746_v1  ;;  %v539_v2 = vpop.f32.mrb[13].mxu1 }
 0x2df   :  { %559 = vst.msk [vmem:[%s1152_s6] sm:$0xff] %vm558_vm2, %v539_v2 }
 0x2e1   :  { %v749_v3 = vpop.f32.mrb[14].mxu1 }
 0x2e2   :  { %562 = vst.msk [vmem:[%s1152_s6 + $0x18] sm:$0xff] %vm558_vm2, %v749_v3  ;;  %v549_v4 = vpop.f32.mrb[15].mxu1 }
 0x2e3   :  { %561 = vst.msk [vmem:[%s1152_s6 + $0x10] sm:$0xff] %vm558_vm2, %v549_v4 }

</bundles_post_ra>
